<compile_context>
chip_gen: v7x
topology: tpu7x:2x2x1
jax: 0.10.0
libtpu: 0.0.40
codegen_flags: <defaults>
</compile_context>

<pallas_src>
import math
import numpy as np
import jax
import jax.numpy as jnp
from jax.experimental import pallas as pl
from jax.experimental.pallas import tpu as pltpu

# ---- problem sizes (small, consistent with the module) ----
BATCH = 2
SEQ = 8
NUM_HEADS = 4
HEAD_DIM = 8
HIDDEN = NUM_HEADS * HEAD_DIM  # 32
LN_EPS = 1e-12


def bert_attention_kernel(
    x_ref,        # (B*S, H)   VMEM  hidden_states, flattened over batch*seq
    mask_ref,     # (B, 1, S)  VMEM  additive attention mask
    codes_ref,    # (B, S, S)  VMEM  int32 edge codes
    wqkv_ref,     # (H, 3H)    VMEM  [wq/sqrt(hd) | wk | wv]
    wo_ref,       # (H, H)     VMEM  output projection weight
    vecs_ref,     # (4, 3H)    VMEM  rows: [bq/sqrt(hd)|bk|bv], [bo|0], [gamma|0], [beta|0]
    edges_ref,    # (3*NH,)    SMEM  [cfg(NH) | cdg(NH) | ddg(NH)]
    out_ref,      # (B*S, H)   VMEM
):
    B, S, NH, HD, H = BATCH, SEQ, NUM_HEADS, HEAD_DIM, HIDDEN
    f32 = jnp.float32

    x = x_ref[...]                                   # (B*S, H)
    vecs = vecs_ref[...]                             # (4, 3H)
    bqkv = vecs[0:1, :]                              # (1, 3H)
    bo = vecs[1:2, :H]                               # (1, H)
    gamma = vecs[2:3, :H]                            # (1, H)
    beta = vecs[3:4, :H]                             # (1, H)

    # --- fused QKV projection: one MXU matmul (Q columns pre-scaled by 1/sqrt(HD)) ---
    qkv = jnp.dot(x, wqkv_ref[...], preferred_element_type=f32) + bqkv     # (B*S, 3H)

    q3 = qkv[:, 0 * H:1 * H].reshape(B, S, H)
    k3 = qkv[:, 1 * H:2 * H].reshape(B, S, H)
    v3 = qkv[:, 2 * H:3 * H].reshape(B, S, H)

    # one-hot head-lane masks (1,1,H) built from a lane iota: keeps heads lane-concatenated,
    # no per-head lane slicing / head-major relayout.
    lane = jax.lax.broadcasted_iota(jnp.int32, (1, H), 1)
    head_masks = [((lane >= n * HD) & (lane < (n + 1) * HD)).astype(f32)[None]
                  for n in range(NH)]                                       # each (1,1,H)

    # group axis g = n*B + b; masking ONE matmul operand per head is sufficient for scores
    qg = jnp.concatenate([q3 * m for m in head_masks], axis=0)              # (G, S, H)
    vg = jnp.concatenate([v3 * m for m in head_masks], axis=0)              # (G, S, H)
    kg = jnp.concatenate([k3] * NH, axis=0)                                 # (G, S, H)

    # all heads x batches scores in ONE batched contraction (scale already folded into Q)
    scores = jnp.einsum('gqh,gkh->gqk', qg, kg, preferred_element_type=f32)  # (G, S, S)

    # edge bias: 7 int compares once, then 3 scalar FMAs per head; attention mask folded in
    codes = codes_ref[...]                                                  # (B, S, S) int32
    eq = {c: (codes == c).astype(f32) for c in (2, 3, 5, 7, 9, 10, 12)}
    ind_cfg = eq[2] + eq[5] + eq[9] + eq[12]
    ind_cdg = eq[3] + eq[5] + eq[10] + eq[12]
    ind_ddg = eq[7] + eq[9] + eq[10] + eq[12]
    mask3 = mask_ref[...]                                                   # (B,1,S) -> keys
    bias = jnp.concatenate(
        [edges_ref[n] * ind_cfg + edges_ref[NH + n] * ind_cdg
         + edges_ref[2 * NH + n] * ind_ddg + mask3
         for n in range(NH)], axis=0)                                       # (G, S, S)

    scores = scores + bias

    # numerically stable softmax over keys; division -> one reciprocal + broadcast multiply
    mx = jnp.max(scores, axis=-1, keepdims=True)
    e = jnp.exp(scores - mx)
    denom = jnp.sum(e, axis=-1, keepdims=True)
    probs = e * pl.reciprocal(denom, approx=False)
    # attention-probs dropout: identity (eval mode)

    ctx = jnp.einsum('gqk,gkh->gqh', probs, vg, preferred_element_type=f32)  # (G, S, H)

    # summing the head groups recovers the lane-concatenated context (each group is nonzero
    # only on its own head's lanes) -> single output-projection matmul against the full Wo
    ctx_b = ctx[0:B]
    for n in range(1, NH):
        ctx_b = ctx_b + ctx[n * B:(n + 1) * B]                               # (B, S, H)
    ctx_flat = ctx_b.reshape(B * S, H)

    # --- BertSelfOutput: dense + bias + residual + LayerNorm (hidden dropout = identity) ---
    y = jnp.dot(ctx_flat, wo_ref[...], preferred_element_type=f32) + bo + x
    mu = jnp.mean(y, axis=-1, keepdims=True)
    var = jnp.mean((y - mu) ** 2, axis=-1, keepdims=True)
    y = (y - mu) * jax.lax.rsqrt(var + LN_EPS)
    y = y * gamma + beta

    # TODO(synk): output kept at natural (B*S, H) layout (32 lanes -> masked stores); a
    #             lane-dense relayout costs more than it saves at this 2 KiB output size.
    out_ref[...] = y.astype(out_ref.dtype)


def bert_attention(x, mask, biasmat, params):
    """x: (B,S,H) f32; mask: (B,1,S) additive f32; biasmat: (B,S,S) integral edge codes."""
    B, S, H = x.shape
    scale = 1.0 / math.sqrt(HEAD_DIM)

    # fused QKV weights with the attention scale folded into the Q projection
    wqkv = jnp.concatenate([params["wq"] * scale, params["wk"], params["wv"]], axis=1)  # (H,3H)
    bqkv = jnp.concatenate([params["bq"] * scale, params["bk"], params["bv"]], axis=1)  # (1,3H)

    # pack all small per-lane vectors into a single VMEM input (rows: bqkv, bo, gamma, beta)
    pad = jnp.zeros((1, 2 * H), jnp.float32)
    vecs = jnp.concatenate(
        [bqkv,
         jnp.concatenate([params["bo"], pad], axis=1),
         jnp.concatenate([params["gamma"], pad], axis=1),
         jnp.concatenate([params["beta"], pad], axis=1)], axis=0)                       # (4,3H)

    # flattened 1-D SMEM scalars: [cfg(NH) | cdg(NH) | ddg(NH)]
    edges = jnp.concatenate(
        [params["cfg"], params["cdg"], params["ddg"]], axis=1).reshape(-1)

    x_flat = x.reshape(B * S, H)
    # edge codes are integral by construction; compare on int32 inside the kernel
    codes = jnp.asarray(biasmat).astype(jnp.int32)

    vmem = pltpu.MemorySpace.VMEM
    smem = pltpu.MemorySpace.SMEM

    out_flat = pl.pallas_call(
        bert_attention_kernel,
        out_shape=jax.ShapeDtypeStruct((B * S, H), jnp.float32),
        in_specs=[
            pl.BlockSpec(memory_space=vmem),   # x_flat
            pl.BlockSpec(memory_space=vmem),   # additive attention mask
            pl.BlockSpec(memory_space=vmem),   # int32 edge-code matrix
            pl.BlockSpec(memory_space=vmem),   # fused QKV weight
            pl.BlockSpec(memory_space=vmem),   # output projection weight
            pl.BlockSpec(memory_space=vmem),   # packed bias / LayerNorm vectors
            pl.BlockSpec(memory_space=smem),   # flattened cfg/cdg/ddg edge scalars
        ],
        out_specs=pl.BlockSpec(memory_space=vmem),
        cost_estimate=pl.CostEstimate(
            flops=220_000, transcendentals=650, bytes_accessed=23_000),
    )(x_flat, mask, codes, wqkv, params["wo"], vecs, edges)

    return out_flat.reshape(B, S, H)


def reference(x, mask, biasmat, params):
    """Plain-JAX reference mirroring the PyTorch module."""
    B, S, H = x.shape
    q = x @ params["wq"] + params["bq"]
    k = x @ params["wk"] + params["bk"]
    v = x @ params["wv"] + params["bv"]

    def split(t):  # (B,S,H) -> (B,nh,S,hd)
        return t.reshape(B, S, NUM_HEADS, HEAD_DIM).transpose(0, 2, 1, 3)

    q, k, v = split(q), split(k), split(v)
    scores = jnp.einsum("bhqd,bhkd->bhqk", q, k) / math.sqrt(HEAD_DIM)

    cfg = params["cfg"].reshape(1, NUM_HEADS, 1, 1)
    cdg = params["cdg"].reshape(1, NUM_HEADS, 1, 1)
    ddg = params["ddg"].reshape(1, NUM_HEADS, 1, 1)
    bm = biasmat[:, None, :, :]
    bias = (
        (bm == 2).astype(jnp.float32) * cfg
        + (bm == 3).astype(jnp.float32) * cdg
        + (bm == 7).astype(jnp.float32) * ddg
        + (bm == 5).astype(jnp.float32) * (cdg + cfg)
        + (bm == 9).astype(jnp.float32) * (cfg + ddg)
        + (bm == 10).astype(jnp.float32) * (ddg + cdg)
        + (bm == 12).astype(jnp.float32) * (cdg + cfg + ddg)
    )
    scores = scores + bias + mask[:, None, :, :]
    probs = jax.nn.softmax(scores, axis=-1)
    ctx = jnp.einsum("bhqk,bhkd->bhqd", probs, v)
    ctx = ctx.transpose(0, 2, 1, 3).reshape(B, S, H)

    y = ctx @ params["wo"] + params["bo"]
    y = y + x
    mu = jnp.mean(y, axis=-1, keepdims=True)
    var = jnp.mean((y - mu) ** 2, axis=-1, keepdims=True)
    y = (y - mu) / jnp.sqrt(var + LN_EPS)
    return y * params["gamma"] + params["beta"]


def make_params(key):
    ks = jax.random.split(key, 12)
    s = 0.05
    return {
        "wq": jax.random.normal(ks[0], (HIDDEN, HIDDEN), jnp.float32) * s,
        "bq": jax.random.normal(ks[1], (1, HIDDEN), jnp.float32) * s,
        "wk": jax.random.normal(ks[2], (HIDDEN, HIDDEN), jnp.float32) * s,
        "bk": jax.random.normal(ks[3], (1, HIDDEN), jnp.float32) * s,
        "wv": jax.random.normal(ks[4], (HIDDEN, HIDDEN), jnp.float32) * s,
        "bv": jax.random.normal(ks[5], (1, HIDDEN), jnp.float32) * s,
        "cfg": jax.random.normal(ks[6], (1, NUM_HEADS), jnp.float32),
        "cdg": jax.random.normal(ks[7], (1, NUM_HEADS), jnp.float32),
        "ddg": jax.random.normal(ks[8], (1, NUM_HEADS), jnp.float32),
        "wo": jax.random.normal(ks[9], (HIDDEN, HIDDEN), jnp.float32) * s,
        "bo": jax.random.normal(ks[10], (1, HIDDEN), jnp.float32) * s,
        "gamma": jnp.ones((1, HIDDEN), jnp.float32),
        "beta": jnp.zeros((1, HIDDEN), jnp.float32),
    }


if __name__ == "__main__":
    key = jax.random.PRNGKey(0)
    k_x, k_m, k_b, k_p = jax.random.split(key, 4)

    x = jax.random.normal(k_x, (BATCH, SEQ, HIDDEN), jnp.float32)

    # additive attention mask: 0 for attended keys, -1e4 for masked keys
    mask_bits = jax.random.bernoulli(k_m, 0.2, (BATCH, 1, SEQ))
    mask = jnp.where(mask_bits, -1e4, 0.0).astype(jnp.float32)

    # edge-code matrix with the codes the module distinguishes
    codes = jnp.array([0, 2, 3, 5, 7, 9, 10, 12], dtype=jnp.int32)
    idx = jax.random.randint(k_b, (BATCH, SEQ, SEQ), 0, codes.shape[0])
    biasmat = codes[idx].astype(jnp.float32)

    params = make_params(k_p)

    out = bert_attention(x, mask, biasmat, params)
    out = jax.block_until_ready(out)

    ref = reference(x, mask, biasmat, params)
    np.testing.assert_allclose(np.asarray(out), np.asarray(ref), rtol=1e-4, atol=1e-4)

    print("KERNEL_OK")
</pallas_src>

<mosaic_0001>
module attributes {stable_mosaic.version = 11 : i64} {
  func.func @bert_attention_kernel(%arg0: memref<16x32xf32, #tpu.memory_space<vmem>>, %arg1: memref<2x1x8xf32, #tpu.memory_space<vmem>>, %arg2: memref<2x8x8xi32, #tpu.memory_space<vmem>>, %arg3: memref<32x96xf32, #tpu.memory_space<vmem>>, %arg4: memref<32x32xf32, #tpu.memory_space<vmem>>, %arg5: memref<4x96xf32, #tpu.memory_space<vmem>>, %arg6: memref<12xf32, #tpu.memory_space<smem>>, %arg7: memref<16x32xf32, #tpu.memory_space<vmem>>) attributes {dimension_semantics = [], scalar_prefetch = 0 : i64, scratch_operands = 0 : i64, tpu.core_type = #tpu.core_type<tc>} {
    %c0 = arith.constant 0 : index
    %c0_0 = arith.constant 0 : index
    %0 = vector.load %arg0[%c0, %c0_0] : memref<16x32xf32, #tpu.memory_space<vmem>>, vector<16x32xf32>
    %c0_1 = arith.constant 0 : index
    %c0_2 = arith.constant 0 : index
    %1 = vector.load %arg5[%c0_1, %c0_2] : memref<4x96xf32, #tpu.memory_space<vmem>>, vector<4x96xf32>
    %2 = vector.extract_strided_slice %1 {offsets = [0, 0], sizes = [1, 96], strides = [1, 1]} : vector<4x96xf32> to vector<1x96xf32>
    %3 = vector.extract_strided_slice %1 {offsets = [1, 0], sizes = [1, 32], strides = [1, 1]} : vector<4x96xf32> to vector<1x32xf32>
    %4 = vector.extract_strided_slice %1 {offsets = [2, 0], sizes = [1, 32], strides = [1, 1]} : vector<4x96xf32> to vector<1x32xf32>
    %5 = vector.extract_strided_slice %1 {offsets = [3, 0], sizes = [1, 32], strides = [1, 1]} : vector<4x96xf32> to vector<1x32xf32>
    %c0_3 = arith.constant 0 : index
    %c0_4 = arith.constant 0 : index
    %6 = vector.load %arg3[%c0_3, %c0_4] : memref<32x96xf32, #tpu.memory_space<vmem>>, vector<32x96xf32>
    %cst = arith.constant dense<0.000000e+00> : vector<16x96xf32>
    %7 = tpu.matmul %0, %6, %cst {dimension_numbers = #tpu.dot_dimension_numbers<[1], [0], [0], [1], [0, 0, 1, 1], [], []>} : vector<16x32xf32>, vector<32x96xf32>, vector<16x96xf32> -> vector<16x96xf32>
    %8 = vector.broadcast %2 : vector<1x96xf32> to vector<16x96xf32>
    %9 = arith.addf %7, %8 : vector<16x96xf32>
    %10 = vector.extract_strided_slice %9 {offsets = [0, 0], sizes = [16, 32], strides = [1, 1]} : vector<16x96xf32> to vector<16x32xf32>
    %11 = vector.shape_cast %10 : vector<16x32xf32> to vector<2x8x32xf32>
    %12 = vector.extract_strided_slice %9 {offsets = [0, 32], sizes = [16, 32], strides = [1, 1]} : vector<16x96xf32> to vector<16x32xf32>
    %13 = vector.shape_cast %12 : vector<16x32xf32> to vector<2x8x32xf32>
    %14 = vector.extract_strided_slice %9 {offsets = [0, 64], sizes = [16, 32], strides = [1, 1]} : vector<16x96xf32> to vector<16x32xf32>
    %15 = vector.shape_cast %14 : vector<16x32xf32> to vector<2x8x32xf32>
    %16 = tpu.iota {dimensions = array<i32: 1>} : vector<1x32xi32>
    %c0_i32 = arith.constant 0 : i32
    %17 = vector.broadcast %c0_i32 : i32 to vector<1x32xi32>
    %18 = arith.cmpi sge, %16, %17 : vector<1x32xi32>
    %c8_i32 = arith.constant 8 : i32
    %19 = vector.broadcast %c8_i32 : i32 to vector<1x32xi32>
    %20 = arith.cmpi slt, %16, %19 : vector<1x32xi32>
    %21 = arith.andi %18, %20 : vector<1x32xi1>
    %22 = arith.extui %21 : vector<1x32xi1> to vector<1x32xi32>
    %23 = arith.sitofp %22 : vector<1x32xi32> to vector<1x32xf32>
    %24 = vector.shape_cast %23 : vector<1x32xf32> to vector<1x1x32xf32>
    %c8_i32_5 = arith.constant 8 : i32
    %25 = vector.broadcast %c8_i32_5 : i32 to vector<1x32xi32>
    %26 = arith.cmpi sge, %16, %25 : vector<1x32xi32>
    %c16_i32 = arith.constant 16 : i32
    %27 = vector.broadcast %c16_i32 : i32 to vector<1x32xi32>
    %28 = arith.cmpi slt, %16, %27 : vector<1x32xi32>
    %29 = arith.andi %26, %28 : vector<1x32xi1>
    %30 = arith.extui %29 : vector<1x32xi1> to vector<1x32xi32>
    %31 = arith.sitofp %30 : vector<1x32xi32> to vector<1x32xf32>
    %32 = vector.shape_cast %31 : vector<1x32xf32> to vector<1x1x32xf32>
    %c16_i32_6 = arith.constant 16 : i32
    %33 = vector.broadcast %c16_i32_6 : i32 to vector<1x32xi32>
    %34 = arith.cmpi sge, %16, %33 : vector<1x32xi32>
    %c24_i32 = arith.constant 24 : i32
    %35 = vector.broadcast %c24_i32 : i32 to vector<1x32xi32>
    %36 = arith.cmpi slt, %16, %35 : vector<1x32xi32>
    %37 = arith.andi %34, %36 : vector<1x32xi1>
    %38 = arith.extui %37 : vector<1x32xi1> to vector<1x32xi32>
    %39 = arith.sitofp %38 : vector<1x32xi32> to vector<1x32xf32>
    %40 = vector.shape_cast %39 : vector<1x32xf32> to vector<1x1x32xf32>
    %c24_i32_7 = arith.constant 24 : i32
    %41 = vector.broadcast %c24_i32_7 : i32 to vector<1x32xi32>
    %42 = arith.cmpi sge, %16, %41 : vector<1x32xi32>
    %c32_i32 = arith.constant 32 : i32
    %43 = vector.broadcast %c32_i32 : i32 to vector<1x32xi32>
    %44 = arith.cmpi slt, %16, %43 : vector<1x32xi32>
    %45 = arith.andi %42, %44 : vector<1x32xi1>
    %46 = arith.extui %45 : vector<1x32xi1> to vector<1x32xi32>
    %47 = arith.sitofp %46 : vector<1x32xi32> to vector<1x32xf32>
    %48 = vector.shape_cast %47 : vector<1x32xf32> to vector<1x1x32xf32>
    %49 = vector.broadcast %24 : vector<1x1x32xf32> to vector<2x8x32xf32>
    %50 = arith.mulf %11, %49 : vector<2x8x32xf32>
    %51 = vector.broadcast %32 : vector<1x1x32xf32> to vector<2x8x32xf32>
    %52 = arith.mulf %11, %51 : vector<2x8x32xf32>
    %53 = vector.broadcast %40 : vector<1x1x32xf32> to vector<2x8x32xf32>
    %54 = arith.mulf %11, %53 : vector<2x8x32xf32>
    %55 = vector.broadcast %48 : vector<1x1x32xf32> to vector<2x8x32xf32>
    %56 = arith.mulf %11, %55 : vector<2x8x32xf32>
    %57 = tpu.concatenate %50, %52, %54, %56 in 0 : vector<2x8x32xf32>, vector<2x8x32xf32>, vector<2x8x32xf32>, vector<2x8x32xf32> -> vector<8x8x32xf32>
    %58 = vector.broadcast %24 : vector<1x1x32xf32> to vector<2x8x32xf32>
    %59 = arith.mulf %15, %58 : vector<2x8x32xf32>
    %60 = vector.broadcast %32 : vector<1x1x32xf32> to vector<2x8x32xf32>
    %61 = arith.mulf %15, %60 : vector<2x8x32xf32>
    %62 = vector.broadcast %40 : vector<1x1x32xf32> to vector<2x8x32xf32>
    %63 = arith.mulf %15, %62 : vector<2x8x32xf32>
    %64 = vector.broadcast %48 : vector<1x1x32xf32> to vector<2x8x32xf32>
    %65 = arith.mulf %15, %64 : vector<2x8x32xf32>
    %66 = tpu.concatenate %59, %61, %63, %65 in 0 : vector<2x8x32xf32>, vector<2x8x32xf32>, vector<2x8x32xf32>, vector<2x8x32xf32> -> vector<8x8x32xf32>
    %67 = tpu.concatenate %13, %13, %13, %13 in 0 : vector<2x8x32xf32>, vector<2x8x32xf32>, vector<2x8x32xf32>, vector<2x8x32xf32> -> vector<8x8x32xf32>
    "tpu.trace_start"() <{level = 10 : i32, message = "gqh,gkh->gqk"}> : () -> ()
    %cst_8 = arith.constant dense<0.000000e+00> : vector<8x8x8xf32>
    %68 = tpu.matmul %57, %67, %cst_8 {dimension_numbers = #tpu.dot_dimension_numbers<[2], [2], [1], [1], [0, 0, 0, 1, 1, 1], [0], [0]>} : vector<8x8x32xf32>, vector<8x8x32xf32>, vector<8x8x8xf32> -> vector<8x8x8xf32>
    "tpu.trace_stop"() : () -> ()
    %c0_9 = arith.constant 0 : index
    %c0_10 = arith.constant 0 : index
    %c0_11 = arith.constant 0 : index
    %69 = vector.load %arg2[%c0_9, %c0_10, %c0_11] : memref<2x8x8xi32, #tpu.memory_space<vmem>>, vector<2x8x8xi32>
    %c2_i32 = arith.constant 2 : i32
    %70 = vector.broadcast %c2_i32 : i32 to vector<2x8x8xi32>
    %71 = arith.cmpi eq, %69, %70 : vector<2x8x8xi32>
    %72 = arith.extui %71 : vector<2x8x8xi1> to vector<2x8x8xi32>
    %73 = arith.sitofp %72 : vector<2x8x8xi32> to vector<2x8x8xf32>
    %c3_i32 = arith.constant 3 : i32
    %74 = vector.broadcast %c3_i32 : i32 to vector<2x8x8xi32>
    %75 = arith.cmpi eq, %69, %74 : vector<2x8x8xi32>
    %76 = arith.extui %75 : vector<2x8x8xi1> to vector<2x8x8xi32>
    %77 = arith.sitofp %76 : vector<2x8x8xi32> to vector<2x8x8xf32>
    %c5_i32 = arith.constant 5 : i32
    %78 = vector.broadcast %c5_i32 : i32 to vector<2x8x8xi32>
    %79 = arith.cmpi eq, %69, %78 : vector<2x8x8xi32>
    %80 = arith.extui %79 : vector<2x8x8xi1> to vector<2x8x8xi32>
    %81 = arith.sitofp %80 : vector<2x8x8xi32> to vector<2x8x8xf32>
    %c7_i32 = arith.constant 7 : i32
    %82 = vector.broadcast %c7_i32 : i32 to vector<2x8x8xi32>
    %83 = arith.cmpi eq, %69, %82 : vector<2x8x8xi32>
    %84 = arith.extui %83 : vector<2x8x8xi1> to vector<2x8x8xi32>
    %85 = arith.sitofp %84 : vector<2x8x8xi32> to vector<2x8x8xf32>
    %c9_i32 = arith.constant 9 : i32
    %86 = vector.broadcast %c9_i32 : i32 to vector<2x8x8xi32>
    %87 = arith.cmpi eq, %69, %86 : vector<2x8x8xi32>
    %88 = arith.extui %87 : vector<2x8x8xi1> to vector<2x8x8xi32>
    %89 = arith.sitofp %88 : vector<2x8x8xi32> to vector<2x8x8xf32>
    %c10_i32 = arith.constant 10 : i32
    %90 = vector.broadcast %c10_i32 : i32 to vector<2x8x8xi32>
    %91 = arith.cmpi eq, %69, %90 : vector<2x8x8xi32>
    %92 = arith.extui %91 : vector<2x8x8xi1> to vector<2x8x8xi32>
    %93 = arith.sitofp %92 : vector<2x8x8xi32> to vector<2x8x8xf32>
    %c12_i32 = arith.constant 12 : i32
    %94 = vector.broadcast %c12_i32 : i32 to vector<2x8x8xi32>
    %95 = arith.cmpi eq, %69, %94 : vector<2x8x8xi32>
    %96 = arith.extui %95 : vector<2x8x8xi1> to vector<2x8x8xi32>
    %97 = arith.sitofp %96 : vector<2x8x8xi32> to vector<2x8x8xf32>
    %98 = arith.addf %73, %81 : vector<2x8x8xf32>
    %99 = arith.addf %98, %89 : vector<2x8x8xf32>
    %100 = arith.addf %99, %97 : vector<2x8x8xf32>
    %101 = arith.addf %77, %81 : vector<2x8x8xf32>
    %102 = arith.addf %101, %93 : vector<2x8x8xf32>
    %103 = arith.addf %102, %97 : vector<2x8x8xf32>
    %104 = arith.addf %85, %89 : vector<2x8x8xf32>
    %105 = arith.addf %104, %93 : vector<2x8x8xf32>
    %106 = arith.addf %105, %97 : vector<2x8x8xf32>
    %c0_12 = arith.constant 0 : index
    %c0_13 = arith.constant 0 : index
    %c0_14 = arith.constant 0 : index
    %107 = vector.load %arg1[%c0_12, %c0_13, %c0_14] : memref<2x1x8xf32, #tpu.memory_space<vmem>>, vector<2x1x8xf32>
    %c0_15 = arith.constant 0 : index
    %108 = memref.load %arg6[%c0_15] : memref<12xf32, #tpu.memory_space<smem>>
    %109 = vector.broadcast %108 : f32 to vector<2x8x8xf32>
    %110 = arith.mulf %109, %100 : vector<2x8x8xf32>
    %c4 = arith.constant 4 : index
    %111 = memref.load %arg6[%c4] : memref<12xf32, #tpu.memory_space<smem>>
    %112 = vector.broadcast %111 : f32 to vector<2x8x8xf32>
    %113 = arith.mulf %112, %103 : vector<2x8x8xf32>
    %114 = arith.addf %110, %113 : vector<2x8x8xf32>
    %c8 = arith.constant 8 : index
    %115 = memref.load %arg6[%c8] : memref<12xf32, #tpu.memory_space<smem>>
    %116 = vector.broadcast %115 : f32 to vector<2x8x8xf32>
    %117 = arith.mulf %116, %106 : vector<2x8x8xf32>
    %118 = arith.addf %114, %117 : vector<2x8x8xf32>
    %119 = vector.broadcast %107 : vector<2x1x8xf32> to vector<2x8x8xf32>
    %120 = arith.addf %118, %119 : vector<2x8x8xf32>
    %c1 = arith.constant 1 : index
    %121 = memref.load %arg6[%c1] : memref<12xf32, #tpu.memory_space<smem>>
    %122 = vector.broadcast %121 : f32 to vector<2x8x8xf32>
    %123 = arith.mulf %122, %100 : vector<2x8x8xf32>
    %c5 = arith.constant 5 : index
    %124 = memref.load %arg6[%c5] : memref<12xf32, #tpu.memory_space<smem>>
    %125 = vector.broadcast %124 : f32 to vector<2x8x8xf32>
    %126 = arith.mulf %125, %103 : vector<2x8x8xf32>
    %127 = arith.addf %123, %126 : vector<2x8x8xf32>
    %c9 = arith.constant 9 : index
    %128 = memref.load %arg6[%c9] : memref<12xf32, #tpu.memory_space<smem>>
    %129 = vector.broadcast %128 : f32 to vector<2x8x8xf32>
    %130 = arith.mulf %129, %106 : vector<2x8x8xf32>
    %131 = arith.addf %127, %130 : vector<2x8x8xf32>
    %132 = vector.broadcast %107 : vector<2x1x8xf32> to vector<2x8x8xf32>
    %133 = arith.addf %131, %132 : vector<2x8x8xf32>
    %c2 = arith.constant 2 : index
    %134 = memref.load %arg6[%c2] : memref<12xf32, #tpu.memory_space<smem>>
    %135 = vector.broadcast %134 : f32 to vector<2x8x8xf32>
    %136 = arith.mulf %135, %100 : vector<2x8x8xf32>
    %c6 = arith.constant 6 : index
    %137 = memref.load %arg6[%c6] : memref<12xf32, #tpu.memory_space<smem>>
    %138 = vector.broadcast %137 : f32 to vector<2x8x8xf32>
    %139 = arith.mulf %138, %103 : vector<2x8x8xf32>
    %140 = arith.addf %136, %139 : vector<2x8x8xf32>
    %c10 = arith.constant 10 : index
    %141 = memref.load %arg6[%c10] : memref<12xf32, #tpu.memory_space<smem>>
    %142 = vector.broadcast %141 : f32 to vector<2x8x8xf32>
    %143 = arith.mulf %142, %106 : vector<2x8x8xf32>
    %144 = arith.addf %140, %143 : vector<2x8x8xf32>
    %145 = vector.broadcast %107 : vector<2x1x8xf32> to vector<2x8x8xf32>
    %146 = arith.addf %144, %145 : vector<2x8x8xf32>
    %c3 = arith.constant 3 : index
    %147 = memref.load %arg6[%c3] : memref<12xf32, #tpu.memory_space<smem>>
    %148 = vector.broadcast %147 : f32 to vector<2x8x8xf32>
    %149 = arith.mulf %148, %100 : vector<2x8x8xf32>
    %c7 = arith.constant 7 : index
    %150 = memref.load %arg6[%c7] : memref<12xf32, #tpu.memory_space<smem>>
    %151 = vector.broadcast %150 : f32 to vector<2x8x8xf32>
    %152 = arith.mulf %151, %103 : vector<2x8x8xf32>
    %153 = arith.addf %149, %152 : vector<2x8x8xf32>
    %c11 = arith.constant 11 : index
    %154 = memref.load %arg6[%c11] : memref<12xf32, #tpu.memory_space<smem>>
    %155 = vector.broadcast %154 : f32 to vector<2x8x8xf32>
    %156 = arith.mulf %155, %106 : vector<2x8x8xf32>
    %157 = arith.addf %153, %156 : vector<2x8x8xf32>
    %158 = vector.broadcast %107 : vector<2x1x8xf32> to vector<2x8x8xf32>
    %159 = arith.addf %157, %158 : vector<2x8x8xf32>
    %160 = tpu.concatenate %120, %133, %146, %159 in 0 : vector<2x8x8xf32>, vector<2x8x8xf32>, vector<2x8x8xf32>, vector<2x8x8xf32> -> vector<8x8x8xf32>
    %161 = arith.addf %68, %160 : vector<8x8x8xf32>
    %cst_16 = arith.constant dense<0xFF800000> : vector<8x8xf32>
    %162 = vector.multi_reduction <maximumf>, %161, %cst_16 [2] : vector<8x8x8xf32> to vector<8x8xf32>
    %163 = vector.shape_cast %162 : vector<8x8xf32> to vector<8x8x1xf32>
    %164 = vector.broadcast %163 : vector<8x8x1xf32> to vector<8x8x8xf32>
    %165 = arith.subf %161, %164 : vector<8x8x8xf32>
    %166 = math.exp %165 : vector<8x8x8xf32>
    %cst_17 = arith.constant dense<0.000000e+00> : vector<8x8xf32>
    %167 = vector.multi_reduction <add>, %166, %cst_17 [2] : vector<8x8x8xf32> to vector<8x8xf32>
    %168 = vector.shape_cast %167 : vector<8x8xf32> to vector<8x8x1xf32>
    %169 = tpu.reciprocal %168 : vector<8x8x1xf32> -> vector<8x8x1xf32>
    %170 = vector.broadcast %169 : vector<8x8x1xf32> to vector<8x8x8xf32>
    %171 = arith.mulf %166, %170 : vector<8x8x8xf32>
    "tpu.trace_start"() <{level = 10 : i32, message = "gqk,gkh->gqh"}> : () -> ()
    %cst_18 = arith.constant dense<0.000000e+00> : vector<8x8x32xf32>
    %172 = tpu.matmul %171, %66, %cst_18 {dimension_numbers = #tpu.dot_dimension_numbers<[2], [1], [1], [2], [0, 0, 0, 1, 1, 2], [0], [0]>} : vector<8x8x8xf32>, vector<8x8x32xf32>, vector<8x8x32xf32> -> vector<8x8x32xf32>
    "tpu.trace_stop"() : () -> ()
    %173 = vector.extract_strided_slice %172 {offsets = [0, 0, 0], sizes = [2, 8, 32], strides = [1, 1, 1]} : vector<8x8x32xf32> to vector<2x8x32xf32>
    %174 = vector.extract_strided_slice %172 {offsets = [2, 0, 0], sizes = [2, 8, 32], strides = [1, 1, 1]} : vector<8x8x32xf32> to vector<2x8x32xf32>
    %175 = arith.addf %173, %174 : vector<2x8x32xf32>
    %176 = vector.extract_strided_slice %172 {offsets = [4, 0, 0], sizes = [2, 8, 32], strides = [1, 1, 1]} : vector<8x8x32xf32> to vector<2x8x32xf32>
    %177 = arith.addf %175, %176 : vector<2x8x32xf32>
    %178 = vector.extract_strided_slice %172 {offsets = [6, 0, 0], sizes = [2, 8, 32], strides = [1, 1, 1]} : vector<8x8x32xf32> to vector<2x8x32xf32>
    %179 = arith.addf %177, %178 : vector<2x8x32xf32>
    %180 = vector.shape_cast %179 : vector<2x8x32xf32> to vector<16x32xf32>
    %c0_19 = arith.constant 0 : index
    %c0_20 = arith.constant 0 : index
    %181 = vector.load %arg4[%c0_19, %c0_20] : memref<32x32xf32, #tpu.memory_space<vmem>>, vector<32x32xf32>
    %cst_21 = arith.constant dense<0.000000e+00> : vector<16x32xf32>
    %182 = tpu.matmul %180, %181, %cst_21 {dimension_numbers = #tpu.dot_dimension_numbers<[1], [0], [0], [1], [0, 0, 1, 1], [], []>} : vector<16x32xf32>, vector<32x32xf32>, vector<16x32xf32> -> vector<16x32xf32>
    %183 = vector.broadcast %3 : vector<1x32xf32> to vector<16x32xf32>
    %184 = arith.addf %182, %183 : vector<16x32xf32>
    %185 = arith.addf %184, %0 : vector<16x32xf32>
    %cst_22 = arith.constant dense<0.000000e+00> : vector<16xf32>
    %186 = vector.multi_reduction <add>, %185, %cst_22 [1] : vector<16x32xf32> to vector<16xf32>
    %187 = vector.shape_cast %186 : vector<16xf32> to vector<16x1xf32>
    %cst_23 = arith.constant 3.200000e+01 : f32
    %188 = vector.broadcast %cst_23 : f32 to vector<16x1xf32>
    %189 = arith.divf %187, %188 : vector<16x1xf32>
    %190 = vector.broadcast %189 : vector<16x1xf32> to vector<16x32xf32>
    %191 = arith.subf %185, %190 : vector<16x32xf32>
    %192 = arith.mulf %191, %191 : vector<16x32xf32>
    %cst_24 = arith.constant dense<0.000000e+00> : vector<16xf32>
    %193 = vector.multi_reduction <add>, %192, %cst_24 [1] : vector<16x32xf32> to vector<16xf32>
    %194 = vector.shape_cast %193 : vector<16xf32> to vector<16x1xf32>
    %cst_25 = arith.constant 3.200000e+01 : f32
    %195 = vector.broadcast %cst_25 : f32 to vector<16x1xf32>
    %196 = arith.divf %194, %195 : vector<16x1xf32>
    %197 = vector.broadcast %189 : vector<16x1xf32> to vector<16x32xf32>
    %198 = arith.subf %185, %197 : vector<16x32xf32>
    %cst_26 = arith.constant 9.99999996E-13 : f32
    %199 = vector.broadcast %cst_26 : f32 to vector<16x1xf32>
    %200 = arith.addf %196, %199 : vector<16x1xf32>
    %201 = math.rsqrt %200 : vector<16x1xf32>
    %202 = vector.broadcast %201 : vector<16x1xf32> to vector<16x32xf32>
    %203 = arith.mulf %198, %202 : vector<16x32xf32>
    %204 = vector.broadcast %4 : vector<1x32xf32> to vector<16x32xf32>
    %205 = arith.mulf %203, %204 : vector<16x32xf32>
    %206 = vector.broadcast %5 : vector<1x32xf32> to vector<16x32xf32>
    %207 = arith.addf %205, %206 : vector<16x32xf32>
    %c0_27 = arith.constant 0 : index
    %c0_28 = arith.constant 0 : index
    %208 = vector.load %arg7[%c0_27, %c0_28] : memref<16x32xf32, #tpu.memory_space<vmem>>, vector<16x32xf32>
    tpu.vector_store %arg7[%c0_27, %c0_28], %207 {strides = array<i32>} : memref<16x32xf32, #tpu.memory_space<vmem>>, vector<16x32xf32>,
    return
  }
}

</mosaic_0001>

<bundles_post_ra>
// kernel: tpu_custom_call.1
= control target key start
LH: loop header
LB: loop body
LE: loop exit
PB: predicated region body
PF: predicated region fallthrough
CT: control target
= control target key end

     0   :  { %12 = vsyncpa [#allocation3], 0  ;;  %s2705_s0 = inlined_call_operand.hbm [shape: f32[16,32], index: 0, kind: input, shape index: {}]   ;;  %s2706_s1 = inlined_call_operand.vmem [shape: f32[2,1,8], index: 1, kind: input, shape index: {}]   ;;  %s2707_s2 = inlined_call_operand.hbm [shape: s32[2,8,8], index: 2, kind: input, shape index: {}]   ;;  %s2708_s3 = inlined_call_operand.hbm [shape: f32[32,96], index: 3, kind: input, shape index: {}]   ;;  %s2709_s4 = inlined_call_operand.hbm [shape: f32[32,32], index: 4, kind: input, shape index: {}]   ;;  %s2710_s5 = inlined_call_operand.vmem [shape: f32[4,96], index: 5, kind: input, shape index: {}]   ;;  %s2711_s6 = inlined_call_operand.vmem [shape: f32[12], index: 6, kind: input, shape index: {}]   ;;  %s2712_s7 = inlined_call_operand.hbm [shape: f32[16,32], index: 7, kind: output, shape index: {}]  }
   0x1   :  { %13 = vsyncpa [#allocation7], 0 }
   0x2   :  { %14 = vsyncpa [#allocation10], 0 }
   0x3   :  { %15 = vsyncpa [#allocation5], 0 }
   0x4   :  { %16 = vsyncpa [#allocation4], 0  ;;  %s2265_s24 = smov [#allocation6]   ;;  %s2266_s26 = smov [#allocation2]  }
   0x5   :  { %s36_s25 = sshll.u32 %s2265_s24, 4  ;;  %s22_s27 = sshll.u32 %s2266_s26, 4  ;;  %s37_s25 = int_to_ptr.vmem [resolvable:$true] %s36_s25  ;;  %s2317_s27 = int_to_ptr.vmem [resolvable:$true] %s22_s27 }
   0x6   :  { %s2133_s30 = scalar_lea.hbm %s2707_s2, 256 }
   0x7   :  { %p2134_p0 = scmp.ne.s32.totalorder %s2707_s2, %s2133_s30  ;;  %p2137_p1 = scmp.lt.u32.totalorder %s2133_s30, %s2707_s2 }
   0x9   :  { %p2139_p2 = pnand %p2137_p1, %p2134_p0 }
   0xb   :  { %2142 = shalt.err (!%p2139_p2)
}
   0xc   :  { %s2143_s12 = scalar_lea.vmem %s37_s25, 256  ;;  %p2148_p4 = scmp.lt.s32.totalorder %s37_s25, %s37_s25 }
   0xd   :  { %p2144_p3 = scmp.ne.s32.totalorder %s37_s25, %s2143_s12  ;;  %p2149_p5 = scmp.lt.s32.totalorder %s2143_s12, %s2143_s12 }
   0xf   :  { %p2150_p6 = por %p2149_p5, %p2148_p4 }
  0x11   :  { %p2151_p7 = pnand %p2150_p6, %p2144_p3 }
  0x13   :  { %2154 = shalt.err (!%p2151_p7)
}
  0x14   :  { %s2267_s13 = smov 128   ;;  %s2268_s14 = smov 8  }
  0x15   :  { %42 = dma.hbm_to_vmem [thread:$0]  %s2707_s2, 256, %s37_s25, [#allocation7], %s2267_s13, %s2267_s13, %s2268_s14  }
  0x16   :  { %s2155_s19 = scalar_lea.hbm %s2705_s0, 256 }
  0x17   :  { %p2156_p8 = scmp.ne.s32.totalorder %s2705_s0, %s2155_s19  ;;  %p2159_p9 = scmp.lt.u32.totalorder %s2155_s19, %s2705_s0 }
  0x19   :  { %p2161_p10 = pnand %p2159_p9, %p2156_p8 }
  0x1b   :  { %2164 = shalt.err (!%p2161_p10)
}
  0x1c   :  { %s2165_s24 = scalar_lea.vmem %s2317_s27, 256  ;;  %p2170_p12 = scmp.lt.s32.totalorder %s2317_s27, %s2317_s27 }
  0x1d   :  { %p2166_p11 = scmp.ne.s32.totalorder %s2317_s27, %s2165_s24  ;;  %p2171_p13 = scmp.lt.s32.totalorder %s2165_s24, %s2165_s24 }
  0x1f   :  { %p2172_p0 = por %p2171_p13, %p2170_p12 }
  0x21   :  { %p2173_p1 = pnand %p2172_p0, %p2166_p11 }
  0x23   :  { %2176 = shalt.err (!%p2173_p1)
}
  0x24   :  { %28 = dma.hbm_to_vmem [thread:$0]  %s2705_s0, 256, %s2317_s27, [#allocation3], %s2267_s13, %s2267_s13, %s2268_s14  }
  0x25   :  { %s2269_s26 = smov [#allocation8]   ;;  %s2270_s29 = smov [#allocation9]  }
  0x26   :  { %s48_s28 = sshll.u32 %s2269_s26, 4  ;;  %s60_s30 = sshll.u32 %s2270_s29, 4  ;;  %s49_s28 = int_to_ptr.vmem [resolvable:$true] %s48_s28  ;;  %s2354_s30 = int_to_ptr.vmem [resolvable:$true] %s60_s30 }
  0x27   :  { %s2177_s10 = scalar_lea.hbm %s2708_s3, 512 }
  0x28   :  { %p2178_p2 = scmp.ne.s32.totalorder %s2708_s3, %s2177_s10  ;;  %p2181_p3 = scmp.lt.u32.totalorder %s2177_s10, %s2708_s3 }
  0x2a   :  { %p2183_p4 = pnand %p2181_p3, %p2178_p2 }
  0x2c   :  { %2186 = shalt.err (!%p2183_p4)
}
  0x2d   :  { %s2187_s0 = scalar_lea.vmem %s49_s28, 512  ;;  %p2192_p6 = scmp.lt.s32.totalorder %s49_s28, %s49_s28 }
  0x2e   :  { %p2188_p5 = scmp.ne.s32.totalorder %s49_s28, %s2187_s0  ;;  %p2193_p7 = scmp.lt.s32.totalorder %s2187_s0, %s2187_s0 }
  0x30   :  { %p2194_p8 = por %p2193_p7, %p2192_p6 }
  0x32   :  { %p2195_p9 = pnand %p2194_p8, %p2188_p5 }
  0x34   :  { %2198 = shalt.err (!%p2195_p9)
}
  0x35   :  { %54 = dma.hbm_to_vmem [thread:$0]  %s2708_s3, 512, %s49_s28, [#allocation7], %s2267_s13, %s2267_s13, %s2268_s14  }
  0x36   :  { %s2199_s20 = scalar_lea.hbm %s2709_s4, 512 }
  0x37   :  { %p2200_p10 = scmp.ne.s32.totalorder %s2709_s4, %s2199_s20  ;;  %p2203_p11 = scmp.lt.u32.totalorder %s2199_s20, %s2709_s4 }
  0x39   :  { %p2205_p12 = pnand %p2203_p11, %p2200_p10 }
  0x3b   :  { %2208 = shalt.err (!%p2205_p12)
}
  0x3c   :  { %s2209_s2 = scalar_lea.vmem %s2354_s30, 512  ;;  %p2214_p0 = scmp.lt.s32.totalorder %s2354_s30, %s2354_s30 }
  0x3d   :  { %p2210_p13 = scmp.ne.s32.totalorder %s2354_s30, %s2209_s2  ;;  %p2215_p1 = scmp.lt.s32.totalorder %s2209_s2, %s2209_s2 }
  0x3f   :  { %p2216_p2 = por %p2215_p1, %p2214_p0 }
  0x41   :  { %p2217_p3 = pnand %p2216_p2, %p2210_p13 }
  0x43   :  { %2220 = shalt.err (!%p2217_p3)
}
  0x44   :  { %66 = dma.hbm_to_vmem [thread:$0]  %s2709_s4, 512, %s2354_s30, [#allocation10], %s2267_s13, %s2267_s13, %s2268_s14  }
  0x45   :  { %s75_s29 = sshll.u32 %s2711_s6, 4  ;;  %s76_s29 = int_to_ptr.vmem [resolvable:$true] %s75_s29 }
  0x46   :  { %s2221_s8 = scalar_lea.vmem %s76_s29, 16  ;;  %p2226_p5 = scmp.lt.s32.totalorder %s76_s29, %s76_s29 }
  0x47   :  { %p2222_p4 = scmp.ne.s32.totalorder %s76_s29, %s2221_s8  ;;  %p2227_p6 = scmp.lt.s32.totalorder %s2221_s8, %s2221_s8 }
  0x49   :  { %p2228_p7 = por %p2227_p6, %p2226_p5 }
  0x4b   :  { %p2229_p8 = pnand %p2228_p7, %p2222_p4 }
  0x4d   :  { %2232 = shalt.err (!%p2229_p8)
}
  0x4e   :  { %s2271_s9 = smov [#allocation11]  }
  0x4f   :  { %78 = dma.vmem_to_smem %s76_s29, 16, %s2271_s9, [#allocation5]  }
  0x50   :  { %2255 = dma.done.wait [#allocation3], 256  }
  0x51   :  { %2256 = vsyncadd [#allocation3], 4294967040 }
  0x52   :  { %2257 = dma.done.wait [#allocation7], 768  }
  0x53   :  { %2258 = vsyncadd [#allocation7], 4294966528 }
  0x54   :  { %2259 = dma.done.wait [#allocation10], 512  }
  0x55   :  { %2260 = vsyncadd [#allocation10], 4294966784 }
  0x56   :  { %2261 = dma.done.wait [#allocation5], 16  }
  0x57   :  { %2262 = vsyncadd [#allocation5], 4294967280 }
  0x58   :  { %94 = sfence }
  0x59   :  { %v98_v0 = vld [vmem:[#allocation8] sm:$0xff]  ;;  %v99_v1 = vld [vmem:[#allocation8 + $0x8] sm:$0xff]  ;;  %v100_v2 = vld [vmem:[#allocation8 + $0x10] sm:$0xff]  ;;  %vm106_vm0 = vcmask 261120   ;;  %v102_v3 = vlaneseq  ;;  %v2272_v7 = vmov 0.0   ;;  %s2273_s4 = smov 64  }
  0x5a   :  { %v2052_v4 = vpack.c.bf16 %v99_v1, %v98_v0  ;;  %v101_v5 = vld [vmem:[#allocation8 + $0x18] sm:$0xff]  ;;  %v2394_v6 = vld [vmem:[#allocation2] sm:$0xff]  ;;  %1961 = vmatprep.subr.mxu1 %v2272_v7  ;;  %v2401_v11 = vld [vmem:[#allocation2 + $0x8] sm:$0xff]  ;;  %vm2274_vm2 = vmmov 0   ;;  %s2275_s10 = smov 96   ;;  %s2492_s11 = sld [smem:[#allocation11 + $0x7]] }
  0x5b   :  { %v2056_v8 = vpack.c.bf16 %v101_v5, %v100_v2  ;;  %1958 = vmatprep.mubr.msk.f32.mxu0 %vm106_vm0, %v2394_v6  ;;  %v189_v9 = vand.u32 127, %v102_v3  ;;  %v2406_v12 = vshrl.u32 %v102_v3, 7  ;;  %1963 = vmatprep.mubr.msk.f32.mxu1 %vm2274_vm2, %v2272_v7  ;;  %v2416_v14 = vld [vmem:[%s2710_s5] sm:$0xf]  ;;  %v243_v33 = vld [vmem:[#allocation6 + $0x8] sm:$0xff]  ;;  %s2490_s5 = sld [smem:[#allocation11 + $0x3]] }
  0x5c   :  { %2053 = vmatprep.subr.bf16.mxu0 %v2052_v4  ;;  %vm245_vm12 = vcmp.eq.s32.totalorder %v243_v33, 2  ;;  %vm251_vm13 = vcmp.eq.s32.totalorder %v243_v33, 3  ;;  %vm257_vm14 = vcmp.eq.s32.totalorder %v243_v33, 5  ;;  %vm263_vm15 = vcmp.eq.s32.totalorder %v243_v33, 7  ;;  %s2495_s12 = sld [smem:[#allocation11 + $0xb]]  ;;  %v242_v60 = vld [vmem:[#allocation6] sm:$0xff] }
  0x5d   :  { %2055 = vmatpush3.bf16.msra.mxu0 %v2052_v4  ;;  %vm191_vm1 = vcmp.lt.s32.totalorder %v189_v9, 8  ;;  %v104_v13 = vsub.s32 0, %v2406_v12  ;;  %vm195_vm3 = vcmp.ge.s32.totalorder %v189_v9, 8  ;;  %vm196_vm4 = vcmp.lt.s32.totalorder %v189_v9, 16  ;;  %v2519_v58 = vld [vmem:[%s2706_s1 + $0x1] ss:$0 sm:$0xff] }
  0x5e   :  { %2057 = vmatprep.subr.bf16.mxu0 %v2056_v8  ;;  %v1849_v10 = vsel %vm191_vm1, 1.0, %v2272_v7  ;;  %vm197_vm5 = vmand %vm195_vm3, %vm196_vm4  ;;  %vm200_vm6 = vcmp.ge.s32.totalorder %v189_v9, 16  ;;  %vm201_vm7 = vcmp.lt.s32.totalorder %v189_v9, 24  ;;  %vm205_vm9 = vcmp.ge.s32.totalorder %v189_v9, 24  ;;  %s2530_s0 = sld [smem:[#allocation11]]  ;;  %s1867_s27 = sld [smem:[#allocation11 + $0x4]] }
  0x5f   :  { %219 = vrot.lane.b32.xlu1 %v1849_v10, %s2273_s4  ;;  %v105_v15 = vrot.slane %v2416_v14, %v104_v13  ;;  %v1850_v20 = vsel %vm197_vm5, 1.0, %v2272_v7  ;;  %vm202_vm8 = vmand %vm200_vm6, %vm201_vm7  ;;  %vm206_vm10 = vcmp.lt.s32.totalorder %v189_v9, 32  ;;  %vm269_vm1 = vcmp.eq.s32.totalorder %v243_v33, 9  ;;  %s2532_s17 = sld [smem:[#allocation11 + $0x2]]  ;;  %s2534_s18 = sld [smem:[#allocation11 + $0x6]] }
  0x60   :  { %v2428_v21 = vsel %vm202_vm8, 1.0, %v2272_v7  ;;  %vm207_vm11 = vmand %vm205_vm9, %vm206_vm10  ;;  %v1854_v34 = vsel %vm245_vm12, 1.0, %v2272_v7  ;;  %v1856_v35 = vsel %vm251_vm13, 1.0, %v2272_v7  ;;  %v1858_v36 = vsel %vm257_vm14, 1.0, %v2272_v7  ;;  %s2537_s19 = sld [smem:[#allocation11 + $0x8]]  ;;  %s2539_s20 = sld [smem:[#allocation11 + $0xa]] }
  0x61   :  { %2059 = vmatpush3.bf16.msra.mxu0 %v2056_v8  ;;  %v2438_v25 = vsel %vm207_vm11, 1.0, %v2272_v7  ;;  %vm275_vm3 = vcmp.eq.s32.totalorder %v243_v33, 10  ;;  %v1860_v37 = vsel %vm263_vm15, 1.0, %v2272_v7  ;;  %v1862_v38 = vsel %vm269_vm1, 1.0, %v2272_v7  ;;  %s2542_s21 = sld [smem:[#allocation11 + $0x1]]  ;;  %s2544_s22 = sld [smem:[#allocation11 + $0x5]] }
  0x62   :  { %1981 = vmatprep.subr.mxu0 %v2272_v7  ;;  %v287_v39 = vadd.f32 %v1858_v36, %v1854_v34  ;;  %v293_v40 = vadd.f32 %v1858_v36, %v1856_v35  ;;  %v1864_v41 = vsel %vm275_vm3, 1.0, %v2272_v7  ;;  %vm281_vm4 = vcmp.eq.s32.totalorder %v243_v33, 12  ;;  %s2549_s23 = sld [smem:[#allocation11 + $0x9]] }
  0x63   :  { %v299_v42 = vadd.f32 %v1862_v38, %v1860_v37  ;;  %v1866_v45 = vsel %vm281_vm4, 1.0, %v2272_v7  ;;  %v373_v49 = vstv %s2490_s5  ;;  %v377_v50 = vstv %s2492_s11 }
  0x64   :  { %1959 = vmatmul.mubr.msk.f32.vlgmr.msra.gmra.mrb[0].mxu0 %vm106_vm0, %v2401_v11  ;;  %v289_v43 = vadd.f32 %v1862_v38, %v287_v39  ;;  %v295_v44 = vadd.f32 %v1864_v41, %v293_v40  ;;  %v383_v54 = vstv %s2495_s12  ;;  %vm244_vm5 = vcmp.eq.s32.totalorder %v242_v60, 2 }
  0x65   :  { %1983 = vmatprep.mubr.msk.f32.mxu0 %vm2274_vm2, %v2272_v7  ;;  %v301_v46 = vadd.f32 %v1864_v41, %v299_v42  ;;  %vm250_vm6 = vcmp.eq.s32.totalorder %v242_v60, 3  ;;  %vm256_vm7 = vcmp.eq.s32.totalorder %v242_v60, 5  ;;  %vm262_vm8 = vcmp.eq.s32.totalorder %v242_v60, 7 }
  0x66   :  { %v2498_v47 = vadd.f32 %v1866_v45, %v289_v43  ;;  %v2500_v48 = vadd.f32 %v1866_v45, %v295_v44  ;;  %v1853_v61 = vsel %vm244_vm5, 1.0, %v2272_v7  ;;  %v1855_v62 = vsel %vm250_vm6, 1.0, %v2272_v7 }
  0x67   :  { %v2504_v51 = vadd.f32 %v1866_v45, %v301_v46  ;;  %v1857_v63 = vsel %vm256_vm7, 1.0, %v2272_v7  ;;  %vm268_vm9 = vcmp.eq.s32.totalorder %v242_v60, 9  ;;  %vm274_vm10 = vcmp.eq.s32.totalorder %v242_v60, 10  ;;  %v1869_v45 = vld [vmem:[%s2706_s1] ss:$0 sm:$0xff]  ;;  %s2276_s1 = smov [#allocation12]  }
  0x68   :  { %v375_v52 = vmul.f32 %v373_v49, %v2498_v47  ;;  %v379_v53 = vmul.f32 %v377_v50, %v2500_v48  ;;  %v1859_v0 = vsel %vm262_vm8, 1.0, %v2272_v7  ;;  %v1861_v1 = vsel %vm268_vm9, 1.0, %v2272_v7  ;;  %s1832_s3 = sshll.u32 %s2276_s1, 4  ;;  %s1833_s3 = int_to_ptr.vmem [resolvable:$true] %s1832_s3 }
  0x69   :  { %v385_v56 = vmul.f32 %v383_v54, %v2504_v51  ;;  %v286_v2 = vadd.f32 %v1857_v63, %v1853_v61  ;;  %v292_v3 = vadd.f32 %v1857_v63, %v1855_v62  ;;  %v1863_v4 = vsel %vm274_vm10, 1.0, %v2272_v7  ;;  %s2233_s25 = scalar_lea.vmem %s1833_s3, 256  ;;  %p2238_p10 = scmp.lt.s32.totalorder %s1833_s3, %s1833_s3 }
  0x6a   :  { %v381_v55 = vadd.f32 %v379_v53, %v375_v52  ;;  %vm280_vm11 = vcmp.eq.s32.totalorder %v242_v60, 12  ;;  %v298_v5 = vadd.f32 %v1861_v1, %v1859_v0  ;;  %v365_v33 = vstv %s2539_s20  ;;  %p2234_p9 = scmp.ne.s32.totalorder %s1833_s3, %s2233_s25  ;;  %p2239_p11 = scmp.lt.s32.totalorder %s2233_s25, %s2233_s25 }
  0x6b   :  { %v288_v8 = vadd.f32 %v1861_v1, %v286_v2  ;;  %v294_v9 = vadd.f32 %v1863_v4, %v292_v3  ;;  %v337_v36 = vstv %s2542_s21  ;;  %v341_v37 = vstv %s2544_s22 }
  0x6c   :  { %v387_v57 = vadd.f32 %v385_v56, %v381_v55  ;;  %v300_v13 = vadd.f32 %v1863_v4, %v298_v5  ;;  %v347_v53 = vstv %s2549_s23  ;;  %v343_v63 = vmul.f32 %v341_v37, %v2500_v48  ;;  %p2240_p12 = por %p2239_p11, %p2238_p10 }
  0x6d   :  { %vm984_vm12 = vcmask 64512  }
  0x6e   :  { %v2522_v59 = vadd.f32 %v2519_v58, %v387_v57  ;;  %p2241_p13 = pnand %p2240_p12, %p2234_p9 }
 0x137   :  { %v1960_v16 = vpop.f32.mrb[0].mxu0 }
 0x138   :  { %v179_v17 = vpop.f32.mrb[1].mxu0  ;;  %v2422_v19 = vadd.f32 %v1960_v16, %v105_v15 }
 0x139   :  { %v2419_v18 = vadd.f32 %v179_v17, %v105_v15  ;;  %v307_v17 = vstv %s2530_s0 }
 0x13a   :  { %v211_v27 = vmul.f32 %v1849_v10, %v2422_v19  ;;  %v213_v30 = vmul.f32 %v1850_v20, %v2422_v19  ;;  %v215_v31 = vmul.f32 %v2428_v21, %v2422_v19  ;;  %v217_v32 = vmul.f32 %v2438_v25, %v2422_v19 }
 0x13b   :  { %391 = vrot.lane.b32.xlu0 %v2419_v18, %s2275_s10  ;;  %v210_v23 = vmul.f32 %v1849_v10, %v2419_v18  ;;  %v214_v24 = vmul.f32 %v2428_v21, %v2419_v18  ;;  %v216_v28 = vmul.f32 %v2438_v25, %v2419_v18  ;;  %v212_v29 = vmul.f32 %v1850_v20, %v2419_v18 }
 0x13c   :  { %v1865_v10 = vsel %vm280_vm11, 1.0, %v2272_v7  ;;  %v309_v34 = vmul.f32 %v307_v17, %v2498_v47 }
 0x13d   :  { %v290_v15 = vadd.f32 %v1865_v10, %v288_v8  ;;  %v296_v16 = vadd.f32 %v1865_v10, %v294_v9 }
 0x13f   :  { %469 = vrot.lane.b32.xlu0 %v2422_v19, %s2275_s10  ;;  %v374_v41 = vmul.f32 %v373_v49, %v290_v15  ;;  %v378_v42 = vmul.f32 %v377_v50, %v296_v16  ;;  %v338_v43 = vmul.f32 %v337_v36, %v290_v15  ;;  %v342_v44 = vmul.f32 %v341_v37, %v296_v16 }
 0x140   :  { %v339_v50 = vmul.f32 %v337_v36, %v2498_v47  ;;  %v367_v36 = vmul.f32 %v365_v33, %v2504_v51 }
 0x141   :  { %v380_v57 = vadd.f32 %v378_v42, %v374_v41  ;;  %v344_v60 = vadd.f32 %v342_v44, %v338_v43 }
 0x143   :  { %225 = vrot.lane.b32.xlu0 %v1850_v20, %s2273_s4  ;;  %v311_v20 = vstv %s1867_s27 }
 0x144   :  { %v313_v35 = vmul.f32 %v311_v20, %v2500_v48 }
 0x146   :  { %v315_v46 = vadd.f32 %v313_v35, %v309_v34 }
 0x1ad   :  { %v392_v22 = vpop.permute.xlu0 %391 }
 0x1ae   :  { %1962 = vmatpush3.xpose.msk.msra.mxu1 %vm106_vm0, %v392_v22  ;;  %1982 = vmatpush3.xpose.msk.msra.mxu0 %vm106_vm0, %v392_v22 }
 0x1af   :  { %1966 = vmatprep.subr.mxu1 %v2272_v7  ;;  %1991 = vmatprep.subr.mxu0 %v2272_v7 }
 0x1b1   :  { %v470_v26 = vpop.permute.xlu0 %469  ;;  %1964 = vmatmul.mubr.msk.f32.vlgmr.msra.gmra.mrb[0].mxu1 %vm106_vm0, %v210_v23  ;;  %1984 = vmatmul.mubr.msk.f32.vlgmr.msra.gmra.mrb[2].mxu0 %vm106_vm0, %v214_v24  ;;  %v308_v23 = vmul.f32 %v307_v17, %v290_v15  ;;  %v312_v24 = vmul.f32 %v311_v20, %v296_v16 }
 0x1b2   :  { %1967 = vmatpush3.xpose.msk.msra.mxu1 %vm106_vm0, %v470_v26  ;;  %1992 = vmatpush3.xpose.msk.msra.mxu0 %vm106_vm0, %v392_v22 }
 0x1b3   :  { %1968 = vmatprep.mubr.msk.f32.mxu1 %vm2274_vm2, %v2272_v7  ;;  %1993 = vmatprep.mubr.msk.f32.mxu0 %vm2274_vm2, %v2272_v7 }
 0x1b4   :  { %1971 = vmatprep.subr.mxu1 %v2272_v7  ;;  %2001 = vmatprep.subr.mxu0 %v2272_v7 }
 0x1b5   :  { %1969 = vmatmul.mubr.msk.f32.vlgmr.msra.gmra.mrb[2].mxu1 %vm106_vm0, %v211_v27  ;;  %1994 = vmatmul.mubr.msk.f32.vlgmr.msra.gmra.mrb[4].mxu0 %vm106_vm0, %v216_v28  ;;  %v359_v27 = vstv %s2534_s18  ;;  %v317_v28 = vstv %s2537_s19 }
 0x1b6   :  { %1972 = vmatpush3.xpose.msk.msra.mxu1 %vm106_vm0, %v392_v22  ;;  %1973 = vmatprep.mubr.msk.f32.mxu1 %vm2274_vm2, %v2272_v7  ;;  %v302_v22 = vadd.f32 %v1865_v10, %v300_v13  ;;  %v319_v52 = vmul.f32 %v317_v28, %v2504_v51  ;;  %v345_v13 = vadd.f32 %v343_v63, %v339_v50 }
 0x1b7   :  { %1976 = vmatprep.subr.mxu1 %v2272_v7  ;;  %2003 = vmatprep.mubr.msk.f32.mxu0 %vm2274_vm2, %v2272_v7  ;;  %v361_v20 = vmul.f32 %v359_v27, %v2500_v48 }
 0x1b8   :  { %v366_v39 = vmul.f32 %v365_v33, %v302_v22  ;;  %v348_v61 = vmul.f32 %v347_v53, %v302_v22  ;;  %v384_v62 = vmul.f32 %v383_v54, %v302_v22  ;;  %v321_v49 = vadd.f32 %v319_v52, %v315_v46 }
 0x1b9   :  { %1974 = vmatmul.mubr.msk.f32.vlgmr.msra.gmra.mrb[4].mxu1 %vm106_vm0, %v212_v29  ;;  %v349_v54 = vmul.f32 %v347_v53, %v2504_v51 }
 0x1ba   :  { %1977 = vmatpush3.xpose.msk.msra.mxu1 %vm106_vm0, %v470_v26  ;;  %1978 = vmatprep.mubr.msk.f32.mxu1 %vm2274_vm2, %v2272_v7  ;;  %v350_v8 = vadd.f32 %v348_v61, %v344_v60  ;;  %v386_v9 = vadd.f32 %v384_v62, %v380_v57  ;;  %v335_v10 = vadd.f32 %v2519_v58, %v321_v49  ;;  %v220_v60 = vpop.permute.xlu1 %219 }
 0x1bb   :  { %1986 = vmatprep.subr.mxu1 %v2272_v7  ;;  %v222_v61 = vmul.f32 %v220_v60, %v2419_v18  ;;  %v2092_v49 = vpack.i.bf16 %v2438_v25, %v2428_v21  ;;  %v223_v50 = vmul.f32 %v220_v60, %v2422_v19 }
 0x1bd   :  { %1979 = vmatmul.mubr.msk.f32.vlgmr.msra.gmra.mrb[6].mxu1 %vm106_vm0, %v213_v30  ;;  %v360_v30 = vmul.f32 %v359_v27, %v296_v16 }
 0x1be   :  { %1987 = vmatpush3.xpose.msk.msra.mxu1 %vm106_vm0, %v470_v26  ;;  %1988 = vmatprep.mubr.msk.f32.mxu1 %vm2274_vm2, %v2272_v7 }
 0x1bf   :  { %1996 = vmatprep.subr.mxu1 %v2272_v7 }
 0x1c1   :  { %1989 = vmatmul.mubr.msk.f32.vlgmr.msra.gmra.mrb[8].mxu1 %vm106_vm0, %v215_v31  ;;  %v314_v31 = vadd.f32 %v312_v24, %v308_v23 }
 0x1c2   :  { %1997 = vmatpush3.xpose.msk.msra.mxu1 %vm106_vm0, %v470_v26  ;;  %1998 = vmatprep.mubr.msk.f32.mxu1 %vm2274_vm2, %v2272_v7  ;;  %v355_v26 = vstv %s2532_s17 }
 0x1c3   :  { %2006 = vmatprep.subr.mxu1 %v2272_v7  ;;  %v356_v29 = vmul.f32 %v355_v26, %v290_v15  ;;  %v357_v17 = vmul.f32 %v355_v26, %v2498_v47 }
 0x1c5   :  { %1999 = vmatmul.mubr.msk.f32.vlgmr.msra.gmra.mrb[10].mxu1 %vm106_vm0, %v217_v32  ;;  %v318_v32 = vmul.f32 %v317_v28, %v302_v22  ;;  %v362_v38 = vadd.f32 %v360_v30, %v356_v29  ;;  %v352_v29 = vadd.f32 %v1869_v45, %v350_v8  ;;  %v388_v30 = vadd.f32 %v1869_v45, %v386_v9 }
 0x1c6   :  { %2008 = vmatprep.mubr.msk.f32.mxu1 %vm2274_vm2, %v2272_v7  ;;  %v363_v35 = vadd.f32 %v361_v20, %v357_v17 }
 0x1c7   :  { %v320_v40 = vadd.f32 %v318_v32, %v314_v31  ;;  %v368_v55 = vadd.f32 %v366_v39, %v362_v38  ;;  %v351_v31 = vadd.f32 %v349_v54, %v345_v13 }
 0x1c9   :  { %v334_v56 = vadd.f32 %v1869_v45, %v320_v40  ;;  %v370_v0 = vadd.f32 %v1869_v45, %v368_v55  ;;  %v353_v48 = vadd.f32 %v2519_v58, %v351_v31  ;;  %v369_v40 = vadd.f32 %v367_v36, %v363_v35 }
 0x1cb   :  { %v371_v43 = vadd.f32 %v2519_v58, %v369_v40  ;;  %v226_v58 = vpop.permute.xlu0 %225 }
 0x1cc   :  { %v229_v62 = vmul.f32 %v226_v58, %v2422_v19  ;;  %v228_v63 = vmul.f32 %v226_v58, %v2419_v18 }
 0x284   :  { %v464_v1 = vpop.f32.mrb[0].mxu1  ;;  %v761_v2 = vpop.f32.mrb[2].mxu0 }
 0x285   :  { %v2569_v3 = vadd.f32 %v464_v1, %v334_v56  ;;  %v1965_v4 = vpop.f32.mrb[1].mxu1  ;;  %v1985_v5 = vpop.f32.mrb[3].mxu0  ;;  %v762_v15 = vadd.f32 %v761_v2, %v370_v0 }
 0x287   :  { %v985_v16 = vsel %vm984_vm12, %v2569_v3, -inf  ;;  %v997_v34 = vsel %vm984_vm12, %v762_v15, -inf }
 0x288   :  { %v907_v22 = vpop.f32.mrb[4].mxu0  ;;  %986 = vmax.xlane.f32.xlu1 %v985_v16  ;;  %v542_v23 = vpop.f32.mrb[2].mxu1 }
 0x289   :  { %v1970_v24 = vpop.f32.mrb[3].mxu1  ;;  %v1995_v28 = vpop.f32.mrb[5].mxu0  ;;  %v543_v32 = vadd.f32 %v542_v23, %v335_v10  ;;  %v2582_v26 = vadd.f32 %v907_v22, %v388_v30 }
 0x28b   :  { %v988_v27 = vsel %vm984_vm12, %v543_v32, -inf  ;;  %v1003_v33 = vsel %vm984_vm12, %v2582_v26, -inf }
 0x28c   :  { %998 = vmax.xlane.f32.xlu1 %v997_v34  ;;  %v615_v37 = vpop.f32.mrb[4].mxu1 }
 0x28d   :  { %v2579_v38 = vadd.f32 %v615_v37, %v352_v29  ;;  %v1975_v47 = vpop.f32.mrb[5].mxu1 }
 0x28f   :  { %v991_v39 = vsel %vm984_vm12, %v2579_v38, -inf }
 0x290   :  { %989 = vmax.xlane.f32.xlu1 %v988_v27  ;;  %992 = vmax.xlane.f32.xlu0 %v991_v39  ;;  %v688_v41 = vpop.f32.mrb[6].mxu1 }
 0x291   :  { %v1980_v42 = vpop.f32.mrb[7].mxu1  ;;  %v2587_v51 = vadd.f32 %v688_v41, %v353_v48 }
 0x293   :  { %v994_v52 = vsel %vm984_vm12, %v2587_v51, -inf }
 0x294   :  { %1004 = vmax.xlane.f32.xlu1 %v1003_v33  ;;  %v834_v44 = vpop.f32.mrb[8].mxu1 }
 0x295   :  { %v1990_v45 = vpop.f32.mrb[9].mxu1  ;;  %v835_v46 = vadd.f32 %v834_v44, %v371_v43 }
 0x297   :  { %v1000_v57 = vsel %vm984_vm12, %v835_v46, -inf }
 0x298   :  { %995 = vmax.xlane.f32.xlu1 %v994_v52  ;;  %v980_v53 = vpop.f32.mrb[10].mxu1 }
 0x299   :  { %v2595_v55 = vadd.f32 %v980_v53, %v2522_v59  ;;  %v2000_v56 = vpop.f32.mrb[11].mxu1 }
 0x29b   :  { %v1006_v59 = vsel %vm984_vm12, %v2595_v55, -inf }
 0x29c   :  { %1001 = vmax.xlane.f32.xlu1 %v1000_v57 }
 0x2a6   :  { %1074 = vrot.lane.b32.xlu0 %v222_v61, %s2273_s4 }
 0x2aa   :  { %1305 = vrot.lane.b32.xlu0 %v229_v62, %s2273_s4 }
 0x2ad   :  { %2093 = vrot.lane.b32.xlu1 %v2092_v49, %s2273_s4 }
 0x2d1   :  { %1007 = vmax.xlane.f32.xlu1 %v1006_v59 }
 0x2e2   :  { %1151 = vrot.lane.b32.xlu1 %v223_v50, %s2273_s4 }
 0x2e6   :  { %1228 = vrot.lane.b32.xlu1 %v228_v63, %s2273_s4 }
 0x315   :  { %v987_v0 = vpop.xlane.xlu1 %986 }
 0x316   :  { %v1009_v28 = vsub.f32 %v2569_v3, %v987_v0 }
 0x318   :  { %v1017_v30 = vmul.f32 1.442695, %v1009_v28 }
 0x319   :  { %v999_v1 = vpop.xlane.xlu1 %998 }
 0x31a   :  { %v1013_v2 = vsub.f32 %v762_v15, %v999_v1 }
 0x31c   :  { %v1025_v21 = vmul.f32 1.442695, %v1013_v2 }
 0x31d   :  { %v990_v25 = vpop.xlane.xlu1 %989  ;;  %v993_v4 = vpop.xlane.xlu0 %992 }
 0x31e   :  { %2097 = vpow2.f32 %v1025_v21  ;;  %v1010_v5 = vsub.f32 %v543_v32, %v990_v25  ;;  %v1011_v31 = vsub.f32 %v2579_v38, %v993_v4 }
 0x320   :  { %v1019_v8 = vmul.f32 1.442695, %v1010_v5  ;;  %v1021_v32 = vmul.f32 1.442695, %v1011_v31 }
 0x321   :  { %v1005_v9 = vpop.xlane.xlu1 %1004  ;;  %v1075_v10 = vpop.permute.xlu0 %1074 }
 0x322   :  { %2099 = vpow2.f32 %v1019_v8  ;;  %2002 = vmatpush3.msra.mxu0 %v1075_v10  ;;  %v1015_v37 = vsub.f32 %v2582_v26, %v1005_v9 }
 0x323   :  { %2011 = vmatprep.subr.mxu0 %v2272_v7  ;;  %2101 = vpow2.f32 %v1017_v30  ;;  %v1698_v30 = vld [vmem:[#allocation9 + $0x18] sm:$0xff] }
 0x324   :  { %2103 = vpow2.f32 %v1021_v32  ;;  %v1029_v48 = vmul.f32 1.442695, %v1015_v37 }
 0x325   :  { %v996_v13 = vpop.xlane.xlu1 %995  ;;  %v1306_v60 = vpop.permute.xlu0 %1305 }
 0x326   :  { %v1012_v34 = vsub.f32 %v2587_v51, %v996_v13 }
 0x328   :  { %v2612_v54 = vpop.eup %2097  ;;  %v1023_v35 = vmul.f32 1.442695, %v1012_v34 }
 0x329   :  { %v1002_v16 = vpop.xlane.xlu1 %1001  ;;  %v1045_v17 = vsel %vm984_vm12, %v2612_v54, 0.0 }
 0x32a   :  { %1046 = vadd.xlane.f32.xlu0 %v1045_v17  ;;  %v1014_v36 = vsub.f32 %v835_v46, %v1002_v16  ;;  %2105 = vpow2.f32 %v1023_v35  ;;  %v1695_v17 = vld [vmem:[#allocation9] sm:$0xff] }
 0x32c   :  { %v2100_v15 = vpop.eup %2099  ;;  %v1027_v47 = vmul.f32 1.442695, %v1014_v36 }
 0x32d   :  { %v2094_v20 = vpop.permute.xlu1 %2093  ;;  %v1036_v22 = vsel %vm984_vm12, %v2100_v15, 0.0  ;;  %v2102_v3 = vpop.eup %2101 }
 0x32e   :  { %v2095_v23 = vunpack.i.l.bf16 %v2094_v20  ;;  %1037 = vadd.xlane.f32.xlu0 %v1036_v22  ;;  %2107 = vpow2.f32 %v1027_v47  ;;  %v1033_v27 = vsel %vm984_vm12, %v2102_v3, 0.0  ;;  %v2104_v38 = vpop.eup %2103 }
 0x32f   :  { %2109 = vpow2.f32 %v1029_v48  ;;  %v1039_v39 = vsel %vm984_vm12, %v2104_v38, 0.0  ;;  %v1701_v48 = vsub.s32 1, %v2406_v12 }
 0x330   :  { %v234_v24 = vmul.f32 %v2095_v23, %v2419_v18  ;;  %v235_v29 = vmul.f32 %v2095_v23, %v2422_v19 }
 0x332   :  { %1382 = vrot.lane.b32.xlu1 %v234_v24, %s2273_s4 }
 0x334   :  { %v2106_v40 = vpop.eup %2105 }
 0x335   :  { %v1042_v41 = vsel %vm984_vm12, %v2106_v40, 0.0 }
 0x338   :  { %v2628_v42 = vpop.eup %2107 }
 0x339   :  { %v2630_v51 = vpop.eup %2109  ;;  %v1048_v44 = vsel %vm984_vm12, %v2628_v42, 0.0 }
 0x33a   :  { %v1051_v46 = vsel %vm984_vm12, %v2630_v51, 0.0 }
 0x344   :  { %1459 = vrot.lane.b32.xlu0 %v235_v29, %s2273_s4 }
 0x356   :  { %1034 = vadd.xlane.f32.xlu1 %v1033_v27 }
 0x35a   :  { %1040 = vadd.xlane.f32.xlu1 %v1039_v39 }
 0x35e   :  { %1043 = vadd.xlane.f32.xlu1 %v1042_v41  ;;  %v1008_v26 = vpop.xlane.xlu1 %1007 }
 0x35f   :  { %v1016_v33 = vsub.f32 %v2595_v55, %v1008_v26  ;;  %v2096_v55 = vunpack.i.h.bf16 %v2094_v20 }
 0x361   :  { %v1031_v43 = vmul.f32 1.442695, %v1016_v33  ;;  %v241_v56 = vmul.f32 %v2096_v55, %v2422_v19  ;;  %v240_v57 = vmul.f32 %v2096_v55, %v2419_v18 }
 0x362   :  { %1049 = vadd.xlane.f32.xlu1 %v1048_v44  ;;  %v1152_v45 = vpop.permute.xlu1 %1151 }
 0x363   :  { %2111 = vpow2.f32 %v1031_v43  ;;  %1052 = vadd.xlane.f32.xlu0 %v1051_v46  ;;  %2007 = vmatpush3.msra.mxu1 %v1152_v45 }
 0x364   :  { %2016 = vmatprep.subr.mxu1 %v2272_v7 }
 0x366   :  { %v1229_v19 = vpop.permute.xlu1 %1228 }
 0x36d   :  { %v2638_v52 = vpop.eup %2111 }
 0x36e   :  { %v1054_v53 = vsel %vm984_vm12, %v2638_v52, 0.0 }
 0x36f   :  { %1055 = vadd.xlane.f32.xlu1 %v1054_v53 }
 0x379   :  { %1613 = vrot.lane.b32.xlu0 %v241_v56, %s2273_s4 }
 0x380   :  { %1536 = vrot.lane.b32.xlu1 %v240_v57, %s2273_s4 }
 0x3a4   :  { %v1383_v59 = vpop.permute.xlu1 %1382 }
 0x3b7   :  { %v1047_v61 = vpop.xlane.xlu0 %1046 }
 0x3bb   :  { %v1038_v58 = vpop.xlane.xlu0 %1037 }
 0x3bc   :  { %2113 = vrcp.f32 %v1038_v58 }
 0x3bf   :  { %v1460_v21 = vpop.permute.xlu0 %1459 }
 0x3c6   :  { %v2114_v62 = vpop.eup %2113 }
 0x3c7   :  { %v1066_v49 = vmul.f32 %v2114_v62, %v2100_v15  ;;  %v1696_v15 = vld [vmem:[#allocation9 + $0x8] sm:$0xff] }
 0x3c8   :  { %v2060_v24 = vpack.c.bf16 %v1696_v15, %v1695_v17 }
 0x3c9   :  { %2009 = vmatmul.mubr.msk.f32.vlgmr.msra.gmra.mrb[12].mxu1 %vm984_vm12, %v1066_v49  ;;  %v1815_v49 = vsub.s32 2, %v2406_v12 }
 0x3ca   :  { %2017 = vmatpush3.msra.mxu1 %v1306_v60  ;;  %2018 = vmatprep.mubr.msk.f32.mxu1 %vm2274_vm2, %v2272_v7 }
 0x3cb   :  { %2026 = vmatprep.subr.mxu1 %v2272_v7 }
 0x3e3   :  { %v1035_v50 = vpop.xlane.xlu1 %1034 }
 0x3e4   :  { %2115 = vrcp.f32 %v1035_v50 }
 0x3e7   :  { %v1041_v18 = vpop.xlane.xlu1 %1040 }
 0x3e8   :  { %2117 = vrcp.f32 %v1041_v18 }
 0x3eb   :  { %v1044_v63 = vpop.xlane.xlu1 %1043 }
 0x3ec   :  { %2119 = vrcp.f32 %v1044_v63 }
 0x3ed   :  { %2121 = vrcp.f32 %v1047_v61 }
 0x3ee   :  { %v2116_v0 = vpop.eup %2115 }
 0x3ef   :  { %v1065_v1 = vmul.f32 %v2116_v0, %v2102_v3  ;;  %v1050_v2 = vpop.xlane.xlu1 %1049  ;;  %v1702_v3 = vrot.slane %v2416_v14, %v1701_v48 }
 0x3f0   :  { %2123 = vrcp.f32 %v1050_v2  ;;  %v1053_v9 = vpop.xlane.xlu0 %1052 }
 0x3f1   :  { %2004 = vmatmul.mubr.msk.f32.vlgmr.msra.gmra.mrb[6].mxu0 %vm984_vm12, %v1065_v1  ;;  %2125 = vrcp.f32 %v1053_v9 }
 0x3f2   :  { %2012 = vmatpush3.msra.mxu0 %v1229_v19  ;;  %2013 = vmatprep.mubr.msk.f32.mxu0 %vm2274_vm2, %v2272_v7  ;;  %v2118_v25 = vpop.eup %2117  ;;  %v1821_v19 = vsub.s32 3, %v2406_v12 }
 0x3f3   :  { %2021 = vmatprep.subr.mxu0 %v2272_v7  ;;  %v1067_v5 = vmul.f32 %v2118_v25, %v2104_v38 }
 0x3f4   :  { %v1614_v28 = vpop.permute.xlu0 %1613  ;;  %v1822_v0 = vrot.slane %v2416_v14, %v1821_v19 }
 0x3f6   :  { %v2120_v4 = vpop.eup %2119 }
 0x3f7   :  { %v1068_v8 = vmul.f32 %v2120_v4, %v2106_v40  ;;  %v2122_v10 = vpop.eup %2121 }
 0x3f8   :  { %v1069_v20 = vmul.f32 %v2122_v10, %v2612_v54  ;;  %v1697_v54 = vld [vmem:[#allocation9 + $0x10] sm:$0xff] }
 0x3f9   :  { %2014 = vmatmul.mubr.msk.f32.vlgmr.msra.gmra.mrb[6].mxu0 %vm984_vm12, %v1067_v5  ;;  %2019 = vmatmul.mubr.msk.f32.vlgmr.msra.gmra.mrb[12].mxu1 %vm984_vm12, %v1068_v8  ;;  %v2064_v34 = vpack.c.bf16 %v1698_v30, %v1697_v54 }
 0x3fa   :  { %2022 = vmatpush3.msra.mxu0 %v1383_v59  ;;  %2027 = vmatpush3.msra.mxu1 %v1460_v21  ;;  %v2124_v13 = vpop.eup %2123  ;;  %v1816_v59 = vrot.slane %v2416_v14, %v1815_v49 }
 0x3fb   :  { %2023 = vmatprep.mubr.msk.f32.mxu0 %vm2274_vm2, %v2272_v7  ;;  %2028 = vmatprep.mubr.msk.f32.mxu1 %vm2274_vm2, %v2272_v7  ;;  %v1070_v22 = vmul.f32 %v2124_v13, %v2628_v42  ;;  %v2126_v29 = vpop.eup %2125 }
 0x3fc   :  { %v1056_v16 = vpop.xlane.xlu1 %1055  ;;  %2031 = vmatprep.subr.mxu0 %v2272_v7  ;;  %2036 = vmatprep.subr.mxu1 %v2272_v7  ;;  %v1071_v32 = vmul.f32 %v2126_v29, %v2630_v51 }
 0x3fd   :  { %2127 = vrcp.f32 %v1056_v16 }
 0x400   :  { %v1537_v23 = vpop.permute.xlu1 %1536 }
 0x401   :  { %2024 = vmatmul.mubr.msk.f32.vlgmr.msra.gmra.mrb[6].mxu0 %vm984_vm12, %v1069_v20  ;;  %2029 = vmatmul.mubr.msk.f32.vlgmr.msra.gmra.mrb[12].mxu1 %vm984_vm12, %v1070_v22 }
 0x402   :  { %2032 = vmatpush3.msra.mxu0 %v1537_v23  ;;  %2037 = vmatpush3.msra.mxu1 %v1614_v28 }
 0x403   :  { %2033 = vmatprep.mubr.msk.f32.mxu0 %vm2274_vm2, %v2272_v7  ;;  %2038 = vmatprep.mubr.msk.f32.mxu1 %vm2274_vm2, %v2272_v7 }
 0x404   :  { %2061 = vmatprep.subr.bf16.mxu0 %v2060_v24 }
 0x407   :  { %v2128_v31 = vpop.eup %2127 }
 0x408   :  { %v1072_v35 = vmul.f32 %v2128_v31, %v2638_v52 }
 0x409   :  { %2034 = vmatmul.mubr.msk.f32.vlgmr.msra.gmra.mrb[6].mxu0 %vm984_vm12, %v1071_v32 }
 0x40a   :  { %2039 = vmatmul.mubr.msk.f32.vlgmr.msra.gmra.mrb[12].mxu1 %vm984_vm12, %v1072_v35  ;;  %2063 = vmatpush3.bf16.msra.mxu0 %v2060_v24 }
 0x40b   :  { %2065 = vmatprep.subr.bf16.mxu0 %v2064_v34 }
 0x40e   :  { %2067 = vmatpush3.bf16.msra.mxu0 %v2064_v34 }
 0x4dc   :  { %v1608_v36 = vpop.f32.mrb[6].mxu0 }
 0x4dd   :  { %v2035_v37 = vpop.f32.mrb[7].mxu0  ;;  %v1685_v7 = vpop.f32.mrb[12].mxu1  ;;  %2049 = vmatprep.mubr.msk.f32.mxu0 %vm106_vm0, %v1608_v36 }
 0x4de   :  { %v2040_v47 = vpop.f32.mrb[13].mxu1  ;;  %2050 = vmatmul.mubr.msk.f32.vlgmr.msra.gmra.mrb[8].mxu0 %vm106_vm0, %v1685_v7 }
 0x5b1   :  { %v2051_v27 = vpop.f32.mrb[8].mxu0 }
 0x5b2   :  { %v1781_v38 = vadd.f32 %v2051_v27, %v1702_v3  ;;  %v1775_v39 = vpop.f32.mrb[9].mxu0 }
 0x5b3   :  { %v1776_v40 = vadd.f32 %v1775_v39, %v1702_v3 }
 0x5b4   :  { %v1785_v41 = vadd.f32 %v1781_v38, %v2401_v11 }
 0x5b5   :  { %v1784_v42 = vadd.f32 %v1776_v40, %v2394_v6 }
 0x5b6   :  { %v1789_v26 = vsel %vm106_vm0, %v1785_v41, 0.0 }
 0x5b7   :  { %1790 = vadd.xlane.f32.xlu0 %v1789_v26  ;;  %v1786_v51 = vsel %vm106_vm0, %v1784_v42, 0.0 }
 0x5b8   :  { %1787 = vadd.xlane.f32.xlu1 %v1786_v51 }
 0x644   :  { %v1791_v33 = vpop.xlane.xlu0 %1790 }
 0x645   :  { %v1794_v43 = vmul.f32 0.03125, %v1791_v33  ;;  %v1788_v44 = vpop.xlane.xlu1 %1787 }
 0x646   :  { %v1793_v45 = vmul.f32 0.03125, %v1788_v44 }
 0x647   :  { %v1796_v46 = vsub.f32 %v1785_v41, %v1794_v43 }
 0x648   :  { %v1795_v52 = vsub.f32 %v1784_v42, %v1793_v45 }
 0x649   :  { %v1798_v53 = vmul.f32 %v1796_v46, %v1796_v46 }
 0x64a   :  { %v1797_v55 = vmul.f32 %v1795_v52, %v1795_v52 }
 0x64b   :  { %v1802_v56 = vsel %vm106_vm0, %v1798_v53, 0.0 }
 0x64c   :  { %1803 = vadd.xlane.f32.xlu1 %v1802_v56  ;;  %v1799_v11 = vsel %vm106_vm0, %v1797_v55, 0.0 }
 0x64d   :  { %1800 = vadd.xlane.f32.xlu0 %v1799_v11 }
 0x6d9   :  { %v1804_v6 = vpop.xlane.xlu1 %1803 }
 0x6da   :  { %v1806_v57 = vmul.f32 0.03125, %v1804_v6  ;;  %v1801_v60 = vpop.xlane.xlu0 %1800 }
 0x6db   :  { %v1805_v61 = vmul.f32 0.03125, %v1801_v60 }
 0x6dc   :  { %v1808_v58 = vadd.f32 1e-12, %v1806_v57 }
 0x6dd   :  { %v1807_v62 = vadd.f32 1e-12, %v1805_v61 }
 0x6de   :  { %2129 = vrsqrt.f32 %v1808_v58 }
 0x6df   :  { %2131 = vrsqrt.f32 %v1807_v62 }
 0x6e8   :  { %v2130_v50 = vpop.eup %2129 }
 0x6e9   :  { %v2132_v18 = vpop.eup %2131  ;;  %v1812_v63 = vmul.f32 %v2130_v50, %v1796_v46 }
 0x6ea   :  { %v1811_v1 = vmul.f32 %v2132_v18, %v1795_v52 }
 0x6eb   :  { %v1818_v2 = vmul.f32 %v1816_v59, %v1812_v63 }
 0x6ec   :  { %v1817_v21 = vmul.f32 %v1816_v59, %v1811_v1 }
 0x6ed   :  { %v1824_v25 = vadd.f32 %v1822_v0, %v1818_v2 }
 0x6ee   :  { %v1823_v4 = vadd.f32 %v1822_v0, %v1817_v21 }
 0x6ef   :  { %1826 = vst.msk [vmem:[#allocation12 + $0x8] sm:$0xff] %vm106_vm0, %v1824_v25 }
 0x6f0   :  { %1825 = vst.msk [vmem:[#allocation12] sm:$0xff] %vm106_vm0, %v1823_v4 }
 0x6f1   :  { %2244 = shalt.err (!%p2241_p13)
}
 0x6f2   :  { %s2245_s29 = scalar_lea.hbm %s2712_s7, 256 }
 0x6f3   :  { %p2246_p0 = scmp.ne.s32.totalorder %s2712_s7, %s2245_s29  ;;  %p2249_p1 = scmp.lt.u32.totalorder %s2245_s29, %s2712_s7 }
 0x6f5   :  { %p2251_p2 = pnand %p2249_p1, %p2246_p0 }
 0x6f7   :  { %2254 = shalt.err (!%p2251_p2)
}
 0x6f8   :  { %1838 = dma.vmem_to_hbm [thread:$0]  %s1833_s3, 256, %s2712_s7, [#allocation4], %s2267_s13, %s2267_s13, %s2268_s14  }
 0x6f9   :  { %2263 = dma.done.wait [#allocation4], 256  }
 0x6fa   :  { %2264 = vsyncadd [#allocation4], 4294967040 }
 0x6fb   :  { %1842 = vsyncpa [#allocation3], 1 }
 0x6fc   :  { %1843 = vsyncpa [#allocation7], 1 }
 0x6fd   :  { %1844 = vsyncpa [#allocation10], 1 }
 0x6fe   :  { %1845 = vsyncpa [#allocation4], 1 }
 0x6ff   :  { %1846 = vsyncpa [#allocation5], 1 }

</bundles_post_ra>
